<compile_context>
chip_gen: v6e
topology: v6e:2x2x1
jax: 0.10.0
libtpu: 0.0.40
codegen_flags: <defaults>
</compile_context>

<pallas_src>
import math

import jax
import jax.numpy as jnp
from jax.experimental import pallas as pl
from jax.experimental.pallas import tpu as pltpu


# ----------------------------------------------------------------------------
# Pallas kernel: row-wise log-softmax over the last (class) axis.
# ----------------------------------------------------------------------------
def _log_softmax_kernel(logits_ref, logp_ref):
    x = logits_ref[...].astype(jnp.float32)                  # (tile_rows, C)
    m = jnp.max(x, axis=-1, keepdims=True)                   # row max (stability)
    s = x - m
    lse = jnp.log(jnp.sum(jnp.exp(s), axis=-1, keepdims=True))
    logp_ref[...] = (s - lse).astype(logp_ref.dtype)


# VMEM budget for the pipeline working set (in/out blocks, double-buffered,
# plus f32 temporaries).  12 MiB keeps us safe even on v5e's small scoped
# default while still allowing thousands of rows per step for small C.
_VMEM_BLOCK_BUDGET = 12 * 1024 * 1024
_VMEM_LIMIT_BYTES = 32 * 1024 * 1024      # <= physical on v5e/v6e/v7x


def _choose_tile_rows(n_rows: int, num_classes: int) -> int:
    """Largest row tile (multiple of 8) whose working set fits the VMEM budget."""
    # The last dim is lane-padded to a multiple of 128 in VMEM; account for it.
    padded_lanes = pl.cdiv(max(num_classes, 1), 128) * 128
    # ~8 block-sized f32 buffers: in/out (double-buffered) + in-kernel temps.
    bytes_per_row = padded_lanes * 4 * 8
    cap = (_VMEM_BLOCK_BUDGET // bytes_per_row) // 8 * 8
    cap = int(max(8, min(cap, 8192)))
    if n_rows <= cap:
        # Full-extent block along rows: always a legal block shape, grid = 1.
        return n_rows
    return cap


def _pallas_log_softmax_2d(x_2d: jnp.ndarray) -> jnp.ndarray:
    """x_2d: [N, C] -> normalized log-probs [N, C] (same dtype as input)."""
    n, c = x_2d.shape
    tile_rows = _choose_tile_rows(n, c)
    grid = (pl.cdiv(n, tile_rows),)

    return pl.pallas_call(
        _log_softmax_kernel,
        out_shape=jax.ShapeDtypeStruct((n, c), x_2d.dtype),
        grid_spec=pltpu.PrefetchScalarGridSpec(
            num_scalar_prefetch=0,
            grid=grid,
            in_specs=[pl.BlockSpec((tile_rows, c), lambda i: (i, 0))],
            out_specs=pl.BlockSpec((tile_rows, c), lambda i: (i, 0)),
        ),
        compiler_params=pltpu.CompilerParams(
            dimension_semantics=("parallel",),
            vmem_limit_bytes=_VMEM_LIMIT_BYTES,
        ),
    )(x_2d)


# ----------------------------------------------------------------------------
# Lightweight distribution object (stand-in for Independent(Categorical(...)))
# ----------------------------------------------------------------------------
class IndependentCategoricalDistribution:
    def __init__(self, log_probs, batch_shape, event_shape):
        # log_probs has shape batch_shape + event_shape + [num_classes]
        self.logits = log_probs                 # normalized logits (log-softmax)
        self.batch_shape = tuple(batch_shape)
        self.event_shape = tuple(event_shape)
        self._probs = None

    @property
    def probs(self):
        # Lazy, matching torch's Categorical.probs (not materialized in-kernel).
        if self._probs is None:
            self._probs = jnp.exp(self.logits)
        return self._probs

    def log_prob(self, value):
        # value: integer array with shape batch_shape + event_shape
        gathered = jnp.take_along_axis(
            self.logits, value[..., None].astype(jnp.int32), axis=-1
        )[..., 0]
        n_event = len(self.event_shape)
        if n_event == 0:
            return gathered
        return jnp.sum(gathered, axis=tuple(range(-n_event, 0)))

    def sample(self, key, sample_shape=()):
        # Glue (not hot path): categorical sampling via Gumbel-max in plain JAX.
        shape = tuple(sample_shape) + self.logits.shape
        g = -jnp.log(-jnp.log(jax.random.uniform(key, shape) + 1e-20) + 1e-20)
        return jnp.argmax(self.logits + g, axis=-1)


class IndependentCategorical:
    """JAX/Pallas port of the PyTorch IndependentCategorical layer."""

    def __init__(self, event_shape, num_classes):
        self.event_shape = list(event_shape)
        self.num_classes = int(num_classes)

    def params_size(self):
        return math.prod(self.event_shape) * self.num_classes

    def __call__(self, logits):
        batch_shape = list(logits.shape[:-1])
        full_shape = tuple(batch_shape) + tuple(self.event_shape) + (self.num_classes,)

        n_rows = int(math.prod(batch_shape) * math.prod(self.event_shape))
        if n_rows == 0 or self.num_classes == 0:
            # Empty batch / event: nothing to normalize.
            logp = jnp.reshape(logits, full_shape)
            return IndependentCategoricalDistribution(
                logp, batch_shape, self.event_shape
            )

        # Contiguous view -> cheap reshape; kernel casts to f32 internally and
        # writes back in the input dtype.
        flat = jnp.reshape(logits, (n_rows, self.num_classes))
        logp_flat = _pallas_log_softmax_2d(flat)
        logp = jnp.reshape(logp_flat, full_shape)
        return IndependentCategoricalDistribution(logp, batch_shape, self.event_shape)


if __name__ == "__main__":
    key = jax.random.PRNGKey(0)

    # --- Case 1: mirrors the docstring example -----------------------------
    # event_shape=[5], num_classes=10, input of shape [7, 5*10].
    event_shape = [5]
    num_classes = 10
    batch = 7

    layer = IndependentCategorical(event_shape=event_shape, num_classes=num_classes)
    assert layer.params_size() == 50

    logits = jax.random.uniform(key, (batch, layer.params_size()), dtype=jnp.float32)

    dist = layer(logits)
    jax.block_until_ready(dist.logits)

    assert dist.batch_shape == (batch,)
    assert dist.event_shape == tuple(event_shape)
    assert dist.logits.shape == (batch, 5, 10)
    assert dist.probs.shape == (batch, 5, 10)

    ref = jax.nn.log_softmax(
        jnp.reshape(logits, (batch, 5, 10)).astype(jnp.float32), axis=-1
    )
    assert jnp.allclose(dist.logits, ref, atol=1e-5, rtol=1e-5)
    assert jnp.allclose(dist.probs, jnp.exp(ref), atol=1e-5, rtol=1e-5)

    value = jax.random.randint(jax.random.PRNGKey(1), (batch, 5), 0, num_classes)
    lp = dist.log_prob(value)
    assert lp.shape == (batch,)
    samp = dist.sample(jax.random.PRNGKey(2), sample_shape=(12,))
    assert samp.shape == (12, batch, 5)
    jax.block_until_ready(lp)
    jax.block_until_ready(samp)

    # --- Case 2: multi-step grid with a ragged last block -------------------
    # 625 * 8 = 5000 rows > tile cap (3072 for C=10) -> grid of 2, last block
    # ragged; exercises Pallas OOB masking instead of wrapper-side padding.
    layer2 = IndependentCategorical(event_shape=[8], num_classes=10)
    logits2 = jax.random.normal(
        jax.random.PRNGKey(3), (625, layer2.params_size()), dtype=jnp.float32
    )
    dist2 = layer2(logits2)
    jax.block_until_ready(dist2.logits)
    ref2 = jax.nn.log_softmax(jnp.reshape(logits2, (625, 8, 10)), axis=-1)
    assert dist2.logits.shape == (625, 8, 10)
    assert jnp.allclose(dist2.logits, ref2, atol=1e-5, rtol=1e-5)

    # --- Case 3: scalar event shape -----------------------------------------
    layer3 = IndependentCategorical(event_shape=[], num_classes=10)
    logits3 = jax.random.uniform(jax.random.PRNGKey(4), (7, 10), dtype=jnp.float32)
    dist3 = layer3(logits3)
    jax.block_until_ready(dist3.logits)
    assert dist3.batch_shape == (7,)
    assert dist3.event_shape == ()
    assert jnp.allclose(
        dist3.logits, jax.nn.log_softmax(logits3, axis=-1), atol=1e-5, rtol=1e-5
    )

    print("KERNEL_OK")
</pallas_src>

<mosaic_0001>
module attributes {stable_mosaic.version = 11 : i64} {
  func.func @_log_softmax_kernel(%arg0: i32, %arg1: memref<35x10xf32, #tpu.memory_space<vmem>>, %arg2: memref<35x10xf32, #tpu.memory_space<vmem>>) attributes {dimension_semantics = [#tpu.dimension_semantics<parallel>], iteration_bounds = array<i64: 1>, scalar_prefetch = 0 : i64, scratch_operands = 0 : i64, tpu.core_type = #tpu.core_type<tc>, window_params = [{transform_indices = @transform_0, window_bounds = array<i64: 35, 10>}, {transform_indices = @transform_1, window_bounds = array<i64: 35, 10>}]} {
    %c0 = arith.constant 0 : index
    %c0_0 = arith.constant 0 : index
    %0 = vector.load %arg1[%c0, %c0_0] : memref<35x10xf32, #tpu.memory_space<vmem>>, vector<35x10xf32>
    %cst = arith.constant dense<0xFF800000> : vector<35xf32>
    %1 = vector.multi_reduction <maximumf>, %0, %cst [1] : vector<35x10xf32> to vector<35xf32>
    %2 = vector.shape_cast %1 : vector<35xf32> to vector<35x1xf32>
    %3 = vector.broadcast %2 : vector<35x1xf32> to vector<35x10xf32>
    %4 = arith.subf %0, %3 : vector<35x10xf32>
    %5 = math.exp %4 : vector<35x10xf32>
    %cst_1 = arith.constant dense<0.000000e+00> : vector<35xf32>
    %6 = vector.multi_reduction <add>, %5, %cst_1 [1] : vector<35x10xf32> to vector<35xf32>
    %7 = vector.shape_cast %6 : vector<35xf32> to vector<35x1xf32>
    %8 = math.log %7 : vector<35x1xf32>
    %9 = vector.broadcast %8 : vector<35x1xf32> to vector<35x10xf32>
    %10 = arith.subf %4, %9 : vector<35x10xf32>
    %c0_2 = arith.constant 0 : index
    %c0_3 = arith.constant 0 : index
    %11 = vector.load %arg2[%c0_2, %c0_3] : memref<35x10xf32, #tpu.memory_space<vmem>>, vector<35x10xf32>
    tpu.vector_store %arg2[%c0_2, %c0_3], %10 {strides = array<i32>} : memref<35x10xf32, #tpu.memory_space<vmem>>, vector<35x10xf32>,
    return
  }
  func.func @transform_0(%arg0: i32) -> (i32, i32) {
    %c0_i32 = arith.constant 0 : i32
    %c0_i32_0 = arith.constant 0 : i32
    return %arg0, %c0_i32 : i32, i32
  }
  func.func @transform_1(%arg0: i32) -> (i32, i32) {
    %c0_i32 = arith.constant 0 : i32
    %c0_i32_0 = arith.constant 0 : i32
    return %arg0, %c0_i32 : i32, i32
  }
}

</mosaic_0001>

<bundles_post_ra>
// kernel: tpu_custom_call.1
= control target key start
LH: loop header
LB: loop body
LE: loop exit
PB: predicated region body
PF: predicated region fallthrough
CT: control target
= control target key end

     0   :  { %vm13_vm0 = vcmask 80896   ;;  %vm26_vm1 = vcmask 75776   ;;  %s159_s0 = inlined_call_operand.vmem [shape: f32[35,10], index: 0, kind: input, shape index: {}]   ;;  %s160_s1 = inlined_call_operand.vmem [shape: f32[35,10], index: 1, kind: output, shape index: {}]  }
   0x1   :  { %v8_v0 = vld [vmem:[%s159_s0] sm:$0xff]  ;;  %v10_v1 = vld [vmem:[%s159_s0 + $0x10] sm:$0xff]  ;;  %v9_v2 = vld [vmem:[%s159_s0 + $0x8] sm:$0xff] }
   0x2   :  { %v14_v3 = vsel %vm13_vm0, %v8_v0, -inf  ;;  %v20_v4 = vsel %vm13_vm0, %v10_v1, -inf  ;;  %v11_v5 = vld [vmem:[%s159_s0 + $0x18] sm:$0xff]  ;;  %v17_v6 = vsel %vm13_vm0, %v9_v2, -inf  ;;  %v12_v8 = vld [vmem:[%s159_s0 + $0x20] sm:$0x7] }
   0x3   :  { %15 = vmax.xlane.f32.xlu0 %v14_v3  ;;  %21 = vmax.xlane.f32.xlu1 %v20_v4  ;;  %v23_v7 = vsel %vm13_vm0, %v11_v5, -inf  ;;  %v27_v9 = vsel %vm26_vm1, %v12_v8, -inf }
   0x7   :  { %18 = vmax.xlane.f32.xlu0 %v17_v6  ;;  %24 = vmax.xlane.f32.xlu1 %v23_v7 }
   0xb   :  { %28 = vmax.xlane.f32.xlu0 %v27_v9 }
  0x8c   :  { %v16_v10 = vpop.xlane.xlu0 %15  ;;  %v22_v11 = vpop.xlane.xlu1 %21 }
  0x8d   :  { %v30_v12 = vsub.f32 %v8_v0, %v16_v10  ;;  %v32_v13 = vsub.f32 %v10_v1, %v22_v11 }
  0x8f   :  { %v35_v14 = vmul.f32 1.442695, %v30_v12  ;;  %v39_v15 = vmul.f32 1.442695, %v32_v13 }
  0x90   :  { %v19_v16 = vpop.xlane.xlu0 %18  ;;  %v25_v17 = vpop.xlane.xlu1 %24 }
  0x91   :  { %84 = vpow2.f32 %v35_v14  ;;  %v31_v18 = vsub.f32 %v9_v2, %v19_v16  ;;  %v33_v19 = vsub.f32 %v11_v5, %v25_v17 }
  0x92   :  { %86 = vpow2.f32 %v39_v15 }
  0x93   :  { %v37_v20 = vmul.f32 1.442695, %v31_v18  ;;  %v41_v21 = vmul.f32 1.442695, %v33_v19 }
  0x94   :  { %v29_v22 = vpop.xlane.xlu0 %28 }
  0x95   :  { %88 = vpow2.f32 %v37_v20  ;;  %v34_v23 = vsub.f32 %v12_v8, %v29_v22 }
  0x96   :  { %90 = vpow2.f32 %v41_v21 }
  0x97   :  { %v43_v24 = vmul.f32 1.442695, %v34_v23 }
  0x99   :  { %92 = vpow2.f32 %v43_v24 }
  0x9e   :  { %v85_v25 = vpop.eup %84 }
  0x9f   :  { %v87_v26 = vpop.eup %86  ;;  %v45_v27 = vsel %vm13_vm0, %v85_v25, 0.0 }
  0xa0   :  { %46 = vadd.xlane.f32.xlu1 %v45_v27  ;;  %v51_v28 = vsel %vm13_vm0, %v87_v26, 0.0 }
  0xa2   :  { %v89_v29 = vpop.eup %88 }
  0xa3   :  { %v91_v30 = vpop.eup %90  ;;  %v48_v31 = vsel %vm13_vm0, %v89_v29, 0.0 }
  0xa4   :  { %52 = vadd.xlane.f32.xlu1 %v51_v28  ;;  %49 = vadd.xlane.f32.xlu0 %v48_v31  ;;  %v54_v32 = vsel %vm13_vm0, %v91_v30, 0.0 }
  0xa6   :  { %v93_v33 = vpop.eup %92 }
  0xa7   :  { %v57_v34 = vsel %vm26_vm1, %v93_v33, 0.0 }
  0xa8   :  { %55 = vadd.xlane.f32.xlu0 %v54_v32  ;;  %58 = vadd.xlane.f32.xlu1 %v57_v34 }
 0x129   :  { %v47_v35 = vpop.xlane.xlu1 %46 }
 0x12a   :  { %94 = vlog2.f32 %v47_v35 }
 0x12d   :  { %v53_v36 = vpop.xlane.xlu1 %52  ;;  %v50_v37 = vpop.xlane.xlu0 %49 }
 0x12e   :  { %96 = vlog2.f32 %v53_v36 }
 0x12f   :  { %98 = vlog2.f32 %v50_v37 }
 0x131   :  { %v59_v38 = vpop.xlane.xlu1 %58  ;;  %v56_v39 = vpop.xlane.xlu0 %55 }
 0x132   :  { %100 = vlog2.f32 %v59_v38 }
 0x133   :  { %102 = vlog2.f32 %v56_v39 }
 0x137   :  { %v95_v40 = vpop.eup %94 }
 0x138   :  { %v61_v41 = vmul.f32 0.6931472, %v95_v40 }
 0x13a   :  { %v70_v42 = vsub.f32 %v30_v12, %v61_v41 }
 0x13b   :  { %v97_v43 = vpop.eup %96 }
 0x13c   :  { %v99_v44 = vpop.eup %98  ;;  %75 = vst.msk [vmem:[%s160_s1] sm:$0xff] %vm13_vm0, %v70_v42  ;;  %v65_v45 = vmul.f32 0.6931472, %v97_v43 }
 0x13d   :  { %v63_v46 = vmul.f32 0.6931472, %v99_v44 }
 0x13e   :  { %v72_v47 = vsub.f32 %v32_v13, %v65_v45 }
 0x13f   :  { %v101_v48 = vpop.eup %100  ;;  %v71_v49 = vsub.f32 %v31_v18, %v63_v46 }
 0x140   :  { %v103_v50 = vpop.eup %102  ;;  %77 = vst.msk [vmem:[%s160_s1 + $0x10] sm:$0xff] %vm13_vm0, %v72_v47  ;;  %v69_v51 = vmul.f32 0.6931472, %v101_v48 }
 0x141   :  { %76 = vst.msk [vmem:[%s160_s1 + $0x8] sm:$0xff] %vm13_vm0, %v71_v49  ;;  %v67_v52 = vmul.f32 0.6931472, %v103_v50 }
 0x142   :  { %v74_v53 = vsub.f32 %v34_v23, %v69_v51 }
 0x143   :  { %v73_v54 = vsub.f32 %v33_v19, %v67_v52 }
 0x144   :  { %79 = vst.msk [vmem:[%s160_s1 + $0x20] sm:$0x7] %vm26_vm1, %v74_v53 }
 0x145   :  { %78 = vst.msk [vmem:[%s160_s1 + $0x18] sm:$0xff] %vm13_vm0, %v73_v54 }

</bundles_post_ra>
